<compile_context>
chip_gen: v6e
topology: v6e:2x2x1
jax: 0.10.0
libtpu: 0.0.40
codegen_flags: <defaults>
</compile_context>

<pallas_src>
import functools

import jax
import jax.numpy as jnp
from jax.experimental import pallas as pl
from jax.experimental.pallas import tpu as pltpu


def _round_up(v, m):
    return (v + m - 1) // m * m


_SQRT_HALF = 0.7071067811865476


def _erf(x):
    # Abramowitz & Stegun 7.1.26 polynomial approximation, |err| <= 1.5e-7.
    a1, a2, a3, a4, a5 = (0.254829592, -0.284496736, 1.421413741,
                          -1.453152027, 1.061405429)
    p = 0.3275911
    ax = jnp.abs(x)
    t = 1.0 / (1.0 + p * ax)
    poly = ((((a5 * t + a4) * t + a3) * t + a2) * t + a1) * t
    r = 1.0 - poly * jnp.exp(-(ax * ax))
    return jnp.where(x < 0, -r, r)


def _gelu_exact(x):
    # nn.GELU() default (erf-based), computed in f32.
    return 0.5 * x * (1.0 + _erf(x * _SQRT_HALF))


def _adapter_kernel(x_ref, wd_ref, bd_ref, wu_ref, bu_ref, o_ref):
    """One row tile: down_proj -> GELU -> up_proj -> +residual (f32 math)."""
    x = x_ref[...]                                                 # (tm, Dp)

    # down_proj: MXU matmul, f32 accumulation, f32 bias add.
    hid = jnp.dot(x, wd_ref[...], preferred_element_type=jnp.float32) + bd_ref[...]

    # Exact GELU (EUP exp + VPU arithmetic).
    g = _gelu_exact(hid)

    # up_proj: cast activation to the weight operand dtype (no-op for f32).
    y = jnp.dot(g.astype(wu_ref.dtype), wu_ref[...],
                preferred_element_type=jnp.float32) + bu_ref[...]

    # Residual add in f32, cast once on the way out.
    o_ref[...] = (y + x.astype(jnp.float32)).astype(o_ref.dtype)


def textual_adapter(x, w_down, b_down, w_up, b_up, *, tm=512):
    """x: (batch, seq, input_dim).  w_down: (D, H), b_down: (H,),
    w_up: (H, D), b_up: (D,).  Returns (batch, seq, input_dim)."""
    batch, seq, d = x.shape
    h = w_down.shape[1]
    n = batch * seq
    x2 = x.reshape(n, d)

    # Lane-dense feature dims.
    d_p = _round_up(d, 128)
    h_p = _round_up(h, 128)

    itemsize = jnp.dtype(x.dtype).itemsize

    def _working_set(t):
        io = 2 * 2 * t * d_p * itemsize           # x + out tiles, double-buffered
        w = 2 * 2 * d_p * h_p * itemsize          # wd + wu (conservatively x2)
        b = 2 * (h_p + d_p) * 4                   # biases
        interm = t * (h_p + d_p) * 4              # f32 intermediate activations
        return io + w + b + interm

    # Row tile: multiple of 8, no larger than the (rounded-up) problem size,
    # and small enough that the working set fits a conservative VMEM budget.
    vmem_budget = 24 * 1024 * 1024
    tm = max(8, min(_round_up(tm, 8), _round_up(n, 8)))
    while tm > 8 and _working_set(tm) > vmem_budget:
        tm = max(8, _round_up(tm // 2, 8))

    n_p = _round_up(n, tm)

    # One-time weight/bias padding + casts (resident across the whole grid).
    op_dtype = x.dtype
    wd = jnp.zeros((d_p, h_p), op_dtype).at[:d, :h].set(w_down.astype(op_dtype))
    wu = jnp.zeros((h_p, d_p), op_dtype).at[:h, :d].set(w_up.astype(op_dtype))
    bd = jnp.zeros((1, h_p), jnp.float32).at[0, :h].set(b_down.astype(jnp.float32))
    bu = jnp.zeros((1, d_p), jnp.float32).at[0, :d].set(b_up.astype(jnp.float32))

    # Pad activations only if actually needed (typical CLIP dims are aligned).
    if n_p == n and d_p == d:
        xp = x2
    else:
        xp = jnp.zeros((n_p, d_p), x.dtype).at[:n, :d].set(x2)

    grid = (n_p // tm,)

    out_p = pl.pallas_call(
        _adapter_kernel,
        out_shape=jax.ShapeDtypeStruct((n_p, d_p), x.dtype),
        grid_spec=pltpu.PrefetchScalarGridSpec(
            num_scalar_prefetch=0,
            grid=grid,
            in_specs=[
                pl.BlockSpec((tm, d_p), lambda i: (i, 0)),    # x row tile (streamed)
                pl.BlockSpec((d_p, h_p), lambda i: (0, 0)),   # down_proj weight (resident)
                pl.BlockSpec((1, h_p), lambda i: (0, 0)),     # down_proj bias (resident)
                pl.BlockSpec((h_p, d_p), lambda i: (0, 0)),   # up_proj weight (resident)
                pl.BlockSpec((1, d_p), lambda i: (0, 0)),     # up_proj bias (resident)
            ],
            out_specs=pl.BlockSpec((tm, d_p), lambda i: (i, 0)),
        ),
        compiler_params=pltpu.CompilerParams(
            dimension_semantics=("parallel",),
            # 48 MiB: generous on v5e/v6e (128 MiB VMEM), still leaves headroom
            # on v7x (64 MiB VMEM).
            vmem_limit_bytes=48 * 1024 * 1024,
        ),
    )(xp, wd, bd, wu, bu)

    out = out_p
    if n_p != n or d_p != d:
        out = out[:n, :d]
    return out.reshape(batch, seq, d)


def _reference(x, w_down, b_down, w_up, b_up):
    xf = x.astype(jnp.float32)
    h = jax.nn.gelu(xf @ w_down.astype(jnp.float32) + b_down.astype(jnp.float32),
                    approximate=False)
    y = h @ w_up.astype(jnp.float32) + b_up.astype(jnp.float32)
    return (y + xf).astype(x.dtype)


if __name__ == "__main__":
    key = jax.random.PRNGKey(0)
    k_x, k_wd, k_bd, k_wu, k_bu = jax.random.split(key, 5)

    batch, seq = 2, 8
    input_dim, hidden_dim = 32, 16

    x = jax.random.normal(k_x, (batch, seq, input_dim), dtype=jnp.float32)

    # Deterministic init mimicking nn.Linear's U(-1/sqrt(fan_in), 1/sqrt(fan_in)).
    # Weights stored pre-transposed as (in_features, out_features).
    lim_d = 1.0 / (input_dim ** 0.5)
    lim_u = 1.0 / (hidden_dim ** 0.5)
    w_down = jax.random.uniform(k_wd, (input_dim, hidden_dim), jnp.float32, -lim_d, lim_d)
    b_down = jax.random.uniform(k_bd, (hidden_dim,), jnp.float32, -lim_d, lim_d)
    w_up = jax.random.uniform(k_wu, (hidden_dim, input_dim), jnp.float32, -lim_u, lim_u)
    b_up = jax.random.uniform(k_bu, (input_dim,), jnp.float32, -lim_u, lim_u)

    fn = jax.jit(functools.partial(textual_adapter, tm=512))
    out = fn(x, w_down, b_down, w_up, b_up)
    out = jax.block_until_ready(out)

    ref = _reference(x, w_down, b_down, w_up, b_up)
    assert out.shape == (batch, seq, input_dim)
    # Tolerance accommodates MXU bf16-pass accumulation of f32 operands
    # (default matmul precision) plus the 1.5e-7 erf polynomial error.
    assert jnp.allclose(out, ref, atol=1e-2, rtol=1e-2), "mismatch vs. reference"

    print("KERNEL_OK")
</pallas_src>

<mosaic_0001>
module attributes {stable_mosaic.version = 11 : i64} {
  func.func @_adapter_kernel(%arg0: i32, %arg1: memref<16x128xf32, #tpu.memory_space<vmem>>, %arg2: memref<128x128xf32, #tpu.memory_space<vmem>>, %arg3: memref<1x128xf32, #tpu.memory_space<vmem>>, %arg4: memref<128x128xf32, #tpu.memory_space<vmem>>, %arg5: memref<1x128xf32, #tpu.memory_space<vmem>>, %arg6: memref<16x128xf32, #tpu.memory_space<vmem>>) attributes {dimension_semantics = [#tpu.dimension_semantics<parallel>], iteration_bounds = array<i64: 1>, scalar_prefetch = 0 : i64, scratch_operands = 0 : i64, tpu.core_type = #tpu.core_type<tc>, window_params = [{transform_indices = @transform_0, window_bounds = array<i64: 16, 128>}, {pipeline_mode = #tpu.pipeline_mode<synchronous>, transform_indices = @transform_1, window_bounds = array<i64: 128, 128>}, {pipeline_mode = #tpu.pipeline_mode<synchronous>, transform_indices = @transform_2, window_bounds = array<i64: 1, 128>}, {pipeline_mode = #tpu.pipeline_mode<synchronous>, transform_indices = @transform_3, window_bounds = array<i64: 128, 128>}, {pipeline_mode = #tpu.pipeline_mode<synchronous>, transform_indices = @transform_4, window_bounds = array<i64: 1, 128>}, {transform_indices = @transform_5, window_bounds = array<i64: 16, 128>}]} {
    %c0 = arith.constant 0 : index
    %c0_0 = arith.constant 0 : index
    %0 = vector.load %arg1[%c0, %c0_0] : memref<16x128xf32, #tpu.memory_space<vmem>>, vector<16x128xf32>
    %c0_1 = arith.constant 0 : index
    %c0_2 = arith.constant 0 : index
    %1 = vector.load %arg2[%c0_1, %c0_2] : memref<128x128xf32, #tpu.memory_space<vmem>>, vector<128x128xf32>
    %cst = arith.constant dense<0.000000e+00> : vector<16x128xf32>
    %2 = tpu.matmul %0, %1, %cst {dimension_numbers = #tpu.dot_dimension_numbers<[1], [0], [0], [1], [0, 0, 1, 1], [], []>} : vector<16x128xf32>, vector<128x128xf32>, vector<16x128xf32> -> vector<16x128xf32>
    %c0_3 = arith.constant 0 : index
    %c0_4 = arith.constant 0 : index
    %3 = vector.load %arg3[%c0_3, %c0_4] : memref<1x128xf32, #tpu.memory_space<vmem>>, vector<1x128xf32>
    %4 = vector.broadcast %3 : vector<1x128xf32> to vector<16x128xf32>
    %5 = arith.addf %2, %4 : vector<16x128xf32>
    %cst_5 = arith.constant 5.000000e-01 : f32
    %6 = vector.broadcast %cst_5 : f32 to vector<16x128xf32>
    %7 = arith.mulf %6, %5 : vector<16x128xf32>
    %cst_6 = arith.constant 0.707106769 : f32
    %8 = vector.broadcast %cst_6 : f32 to vector<16x128xf32>
    %9 = arith.mulf %5, %8 : vector<16x128xf32>
    %10 = math.absf %9 : vector<16x128xf32>
    %cst_7 = arith.constant 0.327591091 : f32
    %11 = vector.broadcast %cst_7 : f32 to vector<16x128xf32>
    %12 = arith.mulf %11, %10 : vector<16x128xf32>
    %cst_8 = arith.constant 1.000000e+00 : f32
    %13 = vector.broadcast %cst_8 : f32 to vector<16x128xf32>
    %14 = arith.addf %13, %12 : vector<16x128xf32>
    %cst_9 = arith.constant 1.000000e+00 : f32
    %15 = vector.broadcast %cst_9 : f32 to vector<16x128xf32>
    %16 = arith.divf %15, %14 : vector<16x128xf32>
    %cst_10 = arith.constant 1.06140542 : f32
    %17 = vector.broadcast %cst_10 : f32 to vector<16x128xf32>
    %18 = arith.mulf %17, %16 : vector<16x128xf32>
    %cst_11 = arith.constant -1.45315206 : f32
    %19 = vector.broadcast %cst_11 : f32 to vector<16x128xf32>
    %20 = arith.addf %18, %19 : vector<16x128xf32>
    %21 = arith.mulf %20, %16 : vector<16x128xf32>
    %cst_12 = arith.constant 1.42141378 : f32
    %22 = vector.broadcast %cst_12 : f32 to vector<16x128xf32>
    %23 = arith.addf %21, %22 : vector<16x128xf32>
    %24 = arith.mulf %23, %16 : vector<16x128xf32>
    %cst_13 = arith.constant -0.284496725 : f32
    %25 = vector.broadcast %cst_13 : f32 to vector<16x128xf32>
    %26 = arith.addf %24, %25 : vector<16x128xf32>
    %27 = arith.mulf %26, %16 : vector<16x128xf32>
    %cst_14 = arith.constant 0.254829586 : f32
    %28 = vector.broadcast %cst_14 : f32 to vector<16x128xf32>
    %29 = arith.addf %27, %28 : vector<16x128xf32>
    %30 = arith.mulf %29, %16 : vector<16x128xf32>
    %31 = arith.mulf %10, %10 : vector<16x128xf32>
    %cst_15 = arith.constant 0.000000e+00 : f32
    %32 = vector.broadcast %cst_15 : f32 to vector<16x128xf32>
    %33 = arith.subf %32, %31 : vector<16x128xf32>
    %34 = math.exp %33 : vector<16x128xf32>
    %35 = arith.mulf %30, %34 : vector<16x128xf32>
    %cst_16 = arith.constant 1.000000e+00 : f32
    %36 = vector.broadcast %cst_16 : f32 to vector<16x128xf32>
    %37 = arith.subf %36, %35 : vector<16x128xf32>
    %cst_17 = arith.constant 0.000000e+00 : f32
    %38 = vector.broadcast %cst_17 : f32 to vector<16x128xf32>
    %39 = arith.cmpf olt, %9, %38 : vector<16x128xf32>
    %cst_18 = arith.constant 0.000000e+00 : f32
    %40 = vector.broadcast %cst_18 : f32 to vector<16x128xf32>
    %41 = arith.subf %40, %37 : vector<16x128xf32>
    %42 = arith.select %39, %41, %37 : vector<16x128xi1>, vector<16x128xf32>
    %cst_19 = arith.constant 1.000000e+00 : f32
    %43 = vector.broadcast %cst_19 : f32 to vector<16x128xf32>
    %44 = arith.addf %43, %42 : vector<16x128xf32>
    %45 = arith.mulf %7, %44 : vector<16x128xf32>
    %c0_20 = arith.constant 0 : index
    %c0_21 = arith.constant 0 : index
    %46 = vector.load %arg4[%c0_20, %c0_21] : memref<128x128xf32, #tpu.memory_space<vmem>>, vector<128x128xf32>
    %cst_22 = arith.constant dense<0.000000e+00> : vector<16x128xf32>
    %47 = tpu.matmul %45, %46, %cst_22 {dimension_numbers = #tpu.dot_dimension_numbers<[1], [0], [0], [1], [0, 0, 1, 1], [], []>} : vector<16x128xf32>, vector<128x128xf32>, vector<16x128xf32> -> vector<16x128xf32>
    %c0_23 = arith.constant 0 : index
    %c0_24 = arith.constant 0 : index
    %48 = vector.load %arg5[%c0_23, %c0_24] : memref<1x128xf32, #tpu.memory_space<vmem>>, vector<1x128xf32>
    %49 = vector.broadcast %48 : vector<1x128xf32> to vector<16x128xf32>
    %50 = arith.addf %47, %49 : vector<16x128xf32>
    %51 = arith.addf %50, %0 : vector<16x128xf32>
    %c0_25 = arith.constant 0 : index
    %c0_26 = arith.constant 0 : index
    %52 = vector.load %arg6[%c0_25, %c0_26] : memref<16x128xf32, #tpu.memory_space<vmem>>, vector<16x128xf32>
    tpu.vector_store %arg6[%c0_25, %c0_26], %51 {strides = array<i32>} : memref<16x128xf32, #tpu.memory_space<vmem>>, vector<16x128xf32>,
    return
  }
  func.func @transform_0(%arg0: i32) -> (i32, i32) {
    %c0_i32 = arith.constant 0 : i32
    %c0_i32_0 = arith.constant 0 : i32
    return %arg0, %c0_i32 : i32, i32
  }
  func.func @transform_1(%arg0: i32) -> (i32, i32) {
    %c0_i32 = arith.constant 0 : i32
    %c0_i32_0 = arith.constant 0 : i32
    %c0_i32_1 = arith.constant 0 : i32
    return %c0_i32, %c0_i32_0 : i32, i32
  }
  func.func @transform_2(%arg0: i32) -> (i32, i32) {
    %c0_i32 = arith.constant 0 : i32
    %c0_i32_0 = arith.constant 0 : i32
    %c0_i32_1 = arith.constant 0 : i32
    return %c0_i32, %c0_i32_0 : i32, i32
  }
  func.func @transform_3(%arg0: i32) -> (i32, i32) {
    %c0_i32 = arith.constant 0 : i32
    %c0_i32_0 = arith.constant 0 : i32
    %c0_i32_1 = arith.constant 0 : i32
    return %c0_i32, %c0_i32_0 : i32, i32
  }
  func.func @transform_4(%arg0: i32) -> (i32, i32) {
    %c0_i32 = arith.constant 0 : i32
    %c0_i32_0 = arith.constant 0 : i32
    %c0_i32_1 = arith.constant 0 : i32
    return %c0_i32, %c0_i32_0 : i32, i32
  }
  func.func @transform_5(%arg0: i32) -> (i32, i32) {
    %c0_i32 = arith.constant 0 : i32
    %c0_i32_0 = arith.constant 0 : i32
    return %arg0, %c0_i32 : i32, i32
  }
}

</mosaic_0001>

<bundles_post_ra>
// kernel: textual_adapter.1
= control target key start
LH: loop header
LB: loop body
LE: loop exit
PB: predicated region body
PF: predicated region fallthrough
CT: control target
= control target key end

     0   :  { %s548_s1 = inlined_call_operand.vmem [shape: f32[128,128], index: 1, kind: input, shape index: {}]   ;;  %s549_s0 = inlined_call_operand.vmem [shape: f32[16,128], index: 0, kind: input, shape index: {}]   ;;  %s550_s3 = inlined_call_operand.vmem [shape: f32[128,128], index: 3, kind: input, shape index: {}]   ;;  %s551_s2 = inlined_call_operand.vmem [shape: f32[1,128], index: 2, kind: input, shape index: {}]   ;;  %s552_s4 = inlined_call_operand.vmem [shape: f32[1,128], index: 4, kind: input, shape index: {}]   ;;  %s553_s5 = inlined_call_operand.vmem [shape: f32[16,128], index: 5, kind: output, shape index: {}]  }
   0x1   :  { %v37_v0 = vld [vmem:[%s548_s1 + $0x78] sm:$0xff]  ;;  %v36_v1 = vld [vmem:[%s548_s1 + $0x70] sm:$0xff]  ;;  %v35_v2 = vld [vmem:[%s548_s1 + $0x68] sm:$0xff] }
   0x2   :  { %318 = vmatprep.subr.mxu0 %v37_v0  ;;  %v34_v3 = vld [vmem:[%s548_s1 + $0x60] sm:$0xff]  ;;  %v33_v5 = vld [vmem:[%s548_s1 + $0x58] sm:$0xff]  ;;  %v32_v6 = vld [vmem:[%s548_s1 + $0x50] sm:$0xff] }
   0x3   :  { %319 = vmatpush3.msra.mxu0 %v37_v0  ;;  %v441_v4 = vld [vmem:[%s549_s0] sm:$0xff]  ;;  %v31_v7 = vld [vmem:[%s548_s1 + $0x48] sm:$0xff]  ;;  %v29_v9 = vld [vmem:[%s548_s1 + $0x38] sm:$0xff] }
   0x4   :  { %320 = vmatprep.subr.mxu0 %v36_v1  ;;  %350 = vmatprep.mubr.f32.mxu0 %v441_v4  ;;  %v30_v8 = vld [vmem:[%s548_s1 + $0x40] sm:$0xff]  ;;  %v28_v10 = vld [vmem:[%s548_s1 + $0x30] sm:$0xff]  ;;  %v27_v11 = vld [vmem:[%s548_s1 + $0x28] sm:$0xff] }
   0x5   :  { %321 = vmatpush3.msra.mxu0 %v36_v1  ;;  %v26_v12 = vld [vmem:[%s548_s1 + $0x20] sm:$0xff]  ;;  %v25_v13 = vld [vmem:[%s548_s1 + $0x18] sm:$0xff]  ;;  %v24_v14 = vld [vmem:[%s548_s1 + $0x10] sm:$0xff] }
   0x6   :  { %322 = vmatprep.subr.mxu0 %v35_v2  ;;  %v23_v15 = vld [vmem:[%s548_s1 + $0x8] sm:$0xff]  ;;  %v22_v16 = vld [vmem:[%s548_s1] sm:$0xff]  ;;  %v189_v18 = vld [vmem:[%s550_s3 + $0x78] sm:$0xff] }
   0x7   :  { %323 = vmatpush3.msra.mxu0 %v35_v2  ;;  %v483_v17 = vld [vmem:[%s549_s0 + $0x8] sm:$0xff]  ;;  %v188_v19 = vld [vmem:[%s550_s3 + $0x70] sm:$0xff]  ;;  %353 = vmatprep.subr.mxu1 %v189_v18  ;;  %v186_v21 = vld [vmem:[%s550_s3 + $0x60] sm:$0xff] }
   0x8   :  { %324 = vmatprep.subr.mxu0 %v34_v3  ;;  %354 = vmatpush3.msra.mxu1 %v189_v18  ;;  %v187_v20 = vld [vmem:[%s550_s3 + $0x68] sm:$0xff]  ;;  %v185_v22 = vld [vmem:[%s550_s3 + $0x58] sm:$0xff]  ;;  %v184_v23 = vld [vmem:[%s550_s3 + $0x50] sm:$0xff] }
   0x9   :  { %325 = vmatpush3.msra.mxu0 %v34_v3  ;;  %355 = vmatprep.subr.mxu1 %v188_v19  ;;  %v183_v24 = vld [vmem:[%s550_s3 + $0x48] sm:$0xff]  ;;  %v182_v25 = vld [vmem:[%s550_s3 + $0x40] sm:$0xff]  ;;  %v181_v26 = vld [vmem:[%s550_s3 + $0x38] sm:$0xff] }
   0xa   :  { %326 = vmatprep.subr.mxu0 %v33_v5  ;;  %356 = vmatpush3.msra.mxu1 %v188_v19  ;;  %v180_v27 = vld [vmem:[%s550_s3 + $0x30] sm:$0xff]  ;;  %v179_v28 = vld [vmem:[%s550_s3 + $0x28] sm:$0xff]  ;;  %v178_v29 = vld [vmem:[%s550_s3 + $0x20] sm:$0xff] }
   0xb   :  { %327 = vmatpush3.msra.mxu0 %v33_v5  ;;  %357 = vmatprep.subr.mxu1 %v187_v20  ;;  %v177_v30 = vld [vmem:[%s550_s3 + $0x18] sm:$0xff]  ;;  %v176_v31 = vld [vmem:[%s550_s3 + $0x10] sm:$0xff]  ;;  %v175_v32 = vld [vmem:[%s550_s3 + $0x8] sm:$0xff] }
   0xc   :  { %328 = vmatprep.subr.mxu0 %v32_v6  ;;  %358 = vmatpush3.msra.mxu1 %v187_v20  ;;  %v174_v33 = vld [vmem:[%s550_s3] sm:$0xff] }
   0xd   :  { %329 = vmatpush3.msra.mxu0 %v32_v6  ;;  %359 = vmatprep.subr.mxu1 %v186_v21  ;;  %v280_v34 = vld [vmem:[%s551_s2] ss:$0 sm:$0xff] }
   0xe   :  { %330 = vmatprep.subr.mxu0 %v31_v7  ;;  %360 = vmatpush3.msra.mxu1 %v186_v21 }
   0xf   :  { %331 = vmatpush3.msra.mxu0 %v31_v7  ;;  %361 = vmatprep.subr.mxu1 %v185_v22 }
  0x10   :  { %332 = vmatprep.subr.mxu0 %v30_v8  ;;  %362 = vmatpush3.msra.mxu1 %v185_v22 }
  0x11   :  { %333 = vmatpush3.msra.mxu0 %v30_v8  ;;  %363 = vmatprep.subr.mxu1 %v184_v23 }
  0x12   :  { %334 = vmatprep.subr.mxu0 %v29_v9  ;;  %364 = vmatpush3.msra.mxu1 %v184_v23 }
  0x13   :  { %335 = vmatpush3.msra.mxu0 %v29_v9  ;;  %365 = vmatprep.subr.mxu1 %v183_v24 }
  0x14   :  { %336 = vmatprep.subr.mxu0 %v28_v10  ;;  %366 = vmatpush3.msra.mxu1 %v183_v24 }
  0x15   :  { %337 = vmatpush3.msra.mxu0 %v28_v10  ;;  %367 = vmatprep.subr.mxu1 %v182_v25 }
  0x16   :  { %338 = vmatprep.subr.mxu0 %v27_v11  ;;  %368 = vmatpush3.msra.mxu1 %v182_v25 }
  0x17   :  { %339 = vmatpush3.msra.mxu0 %v27_v11  ;;  %369 = vmatprep.subr.mxu1 %v181_v26 }
  0x18   :  { %340 = vmatprep.subr.mxu0 %v26_v12  ;;  %370 = vmatpush3.msra.mxu1 %v181_v26 }
  0x19   :  { %341 = vmatpush3.msra.mxu0 %v26_v12  ;;  %371 = vmatprep.subr.mxu1 %v180_v27 }
  0x1a   :  { %342 = vmatprep.subr.mxu0 %v25_v13  ;;  %372 = vmatpush3.msra.mxu1 %v180_v27  ;;  %v281_v27 = vld [vmem:[%s552_s4] ss:$0 sm:$0xff] }
  0x1b   :  { %343 = vmatpush3.msra.mxu0 %v25_v13  ;;  %373 = vmatprep.subr.mxu1 %v179_v28 }
  0x1c   :  { %344 = vmatprep.subr.mxu0 %v24_v14  ;;  %374 = vmatpush3.msra.mxu1 %v179_v28 }
  0x1d   :  { %345 = vmatpush3.msra.mxu0 %v24_v14  ;;  %375 = vmatprep.subr.mxu1 %v178_v29 }
  0x1e   :  { %346 = vmatprep.subr.mxu0 %v23_v15  ;;  %376 = vmatpush3.msra.mxu1 %v178_v29 }
  0x1f   :  { %347 = vmatpush3.msra.mxu0 %v23_v15  ;;  %377 = vmatprep.subr.mxu1 %v177_v30 }
  0x20   :  { %348 = vmatprep.subr.mxu0 %v22_v16  ;;  %378 = vmatpush3.msra.mxu1 %v177_v30 }
  0x21   :  { %349 = vmatpush3.msra.mxu0 %v22_v16  ;;  %379 = vmatprep.subr.mxu1 %v176_v31 }
  0x22   :  { %351 = vmatmul.mubr.f32.vlgmr.msra.gmra.mxu0 %v483_v17  ;;  %380 = vmatpush3.msra.mxu1 %v176_v31 }
  0x23   :  { %381 = vmatprep.subr.mxu1 %v175_v32 }
  0x24   :  { %382 = vmatpush3.msra.mxu1 %v175_v32 }
  0x25   :  { %383 = vmatprep.subr.mxu1 %v174_v33 }
  0x26   :  { %384 = vmatpush3.msra.mxu1 %v174_v33 }
  0xe2   :  { %v352_v35 = vpop.f32.mrf.mxu0 }
  0xe3   :  { %v117_v36 = vadd.f32 %v352_v35, %v280_v34 }
  0xe4   :  { %v111_v37 = vpop.f32.mrf.mxu0 }
  0xe5   :  { %v123_v38 = vmul.f32 0.70710677, %v117_v36  ;;  %v112_v39 = vadd.f32 %v280_v34, %v111_v37  ;;  %v121_v24 = vmul.f32 0.5, %v117_v36 }
  0xe7   :  { %v125_v40 = vand.u32 2147483647, %v123_v38  ;;  %v122_v41 = vmul.f32 0.70710677, %v112_v39  ;;  %vm165_vm0 = vcmp.lt.f32.partialorder %v123_v38, 0.0  ;;  %v120_v22 = vmul.f32 0.5, %v112_v39 }
  0xe9   :  { %v127_v42 = vmul.f32 0.3275911, %v125_v40  ;;  %v124_v43 = vand.u32 2147483647, %v122_v41  ;;  %v153_v47 = vmul.f32 %v125_v40, %v125_v40  ;;  %vm164_vm1 = vcmp.lt.f32.partialorder %v122_v41, 0.0 }
  0xeb   :  { %v129_v44 = vadd.f32 1.0, %v127_v42  ;;  %v126_v45 = vmul.f32 0.3275911, %v124_v43  ;;  %v152_v48 = vmul.f32 %v124_v43, %v124_v43  ;;  %v155_v49 = vsub.f32 0.0, %v153_v47 }
  0xed   :  { %388 = vrcp.f32 %v129_v44  ;;  %v128_v46 = vadd.f32 1.0, %v126_v45  ;;  %v154_v51 = vsub.f32 0.0, %v152_v48  ;;  %v158_v52 = vmul.f32 1.442695, %v155_v49 }
  0xef   :  { %390 = vrcp.f32 %v128_v46  ;;  %v156_v56 = vmul.f32 1.442695, %v154_v51 }
  0xf0   :  { %392 = vpow2.f32 %v158_v52 }
  0xf1   :  { %394 = vpow2.f32 %v156_v56 }
  0xfa   :  { %v389_v50 = vpop.eup %388 }
  0xfb   :  { %v135_v53 = vmul.f32 1.0614054, %v389_v50 }
  0xfc   :  { %v391_v54 = vpop.eup %390 }
  0xfd   :  { %v137_v55 = vadd.f32 -1.4531521, %v135_v53  ;;  %v134_v57 = vmul.f32 1.0614054, %v391_v54  ;;  %v393_v8 = vpop.eup %392 }
  0xfe   :  { %v395_v12 = vpop.eup %394 }
  0xff   :  { %v139_v58 = vmul.f32 %v389_v50, %v137_v55  ;;  %v136_v59 = vadd.f32 -1.4531521, %v134_v57 }
 0x101   :  { %v141_v60 = vadd.f32 1.4214138, %v139_v58  ;;  %v138_v61 = vmul.f32 %v391_v54, %v136_v59 }
 0x103   :  { %v143_v62 = vmul.f32 %v389_v50, %v141_v60  ;;  %v140_v63 = vadd.f32 1.4214138, %v138_v61 }
 0x105   :  { %v145_v0 = vadd.f32 -0.28449672, %v143_v62  ;;  %v142_v1 = vmul.f32 %v391_v54, %v140_v63 }
 0x107   :  { %v147_v2 = vmul.f32 %v389_v50, %v145_v0  ;;  %v144_v3 = vadd.f32 -0.28449672, %v142_v1 }
 0x109   :  { %v149_v5 = vadd.f32 0.2548296, %v147_v2  ;;  %v146_v6 = vmul.f32 %v391_v54, %v144_v3 }
 0x10b   :  { %v151_v7 = vmul.f32 %v389_v50, %v149_v5  ;;  %v148_v9 = vadd.f32 0.2548296, %v146_v6 }
 0x10d   :  { %v161_v10 = vmul.f32 %v393_v8, %v151_v7  ;;  %v150_v11 = vmul.f32 %v391_v54, %v148_v9 }
 0x10f   :  { %v163_v13 = vsub.f32 1.0, %v161_v10  ;;  %v160_v14 = vmul.f32 %v395_v12, %v150_v11 }
 0x111   :  { %v167_v15 = vsub.f32 0.0, %v163_v13  ;;  %v162_v16 = vsub.f32 1.0, %v160_v14 }
 0x113   :  { %v169_v18 = vsel %vm165_vm0, %v167_v15, %v163_v13  ;;  %v166_v19 = vsub.f32 0.0, %v162_v16 }
 0x114   :  { %v171_v21 = vadd.f32 1.0, %v169_v18 }
 0x115   :  { %v168_v20 = vsel %vm164_vm1, %v166_v19, %v162_v16 }
 0x116   :  { %v170_v23 = vadd.f32 1.0, %v168_v20  ;;  %v173_v26 = vmul.f32 %v171_v21, %v121_v24 }
 0x118   :  { %v172_v25 = vmul.f32 %v170_v23, %v120_v22 }
 0x11a   :  { %385 = vmatprep.mubr.f32.mxu1 %v172_v25 }
 0x11b   :  { %386 = vmatmul.mubr.f32.vlgmr.msra.gmra.mxu1 %v173_v26 }
 0x1db   :  { %v387_v28 = vpop.f32.mrf.mxu1 }
 0x1dc   :  { %v269_v29 = vadd.f32 %v387_v28, %v281_v27 }
 0x1dd   :  { %v263_v30 = vpop.f32.mrf.mxu1 }
 0x1de   :  { %v273_v31 = vadd.f32 %v269_v29, %v483_v17  ;;  %v264_v32 = vadd.f32 %v281_v27, %v263_v30 }
 0x1e0   :  { %275 = vst [vmem:[%s553_s5 + $0x8] sm:$0xff] %v273_v31  ;;  %v272_v33 = vadd.f32 %v264_v32, %v441_v4 }
 0x1e2   :  { %274 = vst [vmem:[%s553_s5] sm:$0xff] %v272_v33 }

</bundles_post_ra>
